<compile_context>
chip_gen: v7x
topology: tpu7x:2x2x1
jax: 0.10.0
libtpu: 0.0.40
codegen_flags: <defaults>
</compile_context>

<pallas_src>
import jax
import jax.numpy as jnp
from jax.experimental import pallas as pl
from jax.experimental.pallas import tpu as pltpu

CHANNEL = 7
REDUCTION = 4
CR = CHANNEL // REDUCTION       # = 1
HIDDEN = 64
BN_EPS = 1e-5

# ---- packed parameter slab layout: (P_ROWS, P_COLS) f32, all static slices in-kernel ----
P_ROWS = 16
P_COLS = HIDDEN                 # 64 lanes (padded to 128 in VMEM; slab is ~4 KB)
_R_FC1B = 0                     # row 0, cols 0:64 : fc1 folded bias           (64,)
_R_FC2 = 1                      # row 1, cols 0:64 : fc2 weight * bn1 scale    (64,)
_R_AW1 = 2                      # row 2, cols 0:7  : attn Linear(7->1) * BN(7) (7,)
_R_AW2 = 3                      # row 3, cols 0:7  : attn Linear(1->7) * BN(1) (7,)
_R_AB2 = 4                      # row 4, cols 0:7  : attn Linear(1->7) @ BN(1) shift (7,)
_R_SC = 5                       # row 5, col 0 : attn folded bias ab1 ; col 1 : fc2 folded bias
_R_FC1T = 8                     # rows 8:15, cols 0:64 : (fc1 * bn0-scale)^T   (7, 64)


def _triplet_fused_kernel(a_ref, p_ref, n_ref, w_ref, oa_ref, op_ref, on_ref):
    """Single grid step: all three branches. data refs (B,7), params (16,64), outs (B,2)."""
    B = a_ref.shape[0]
    # (3B, 7): anchor rows 0:B, positive B:2B, negative 2B:3B
    hu = jnp.concatenate([a_ref[...], p_ref[...], n_ref[...]], axis=0)

    # ---- unpack folded params (static slices of the packed slab) ----
    fc1T = w_ref[_R_FC1T:_R_FC1T + CHANNEL, 0:HIDDEN]      # (7, 64) bn0 folded, transposed
    fc1_b = w_ref[_R_FC1B:_R_FC1B + 1, 0:HIDDEN]           # (1, 64)
    fc2_r = w_ref[_R_FC2:_R_FC2 + 1, 0:HIDDEN]             # (1, 64) bn1 folded into fc2
    aw1_r = w_ref[_R_AW1:_R_AW1 + 1, 0:CHANNEL]            # (1, 7)
    aw2_r = w_ref[_R_AW2:_R_AW2 + 1, 0:CHANNEL]            # (1, 7)
    ab2_r = w_ref[_R_AB2:_R_AB2 + 1, 0:CHANNEL]            # (1, 7)
    ab1 = w_ref[_R_SC:_R_SC + 1, 0:1]                      # (1, 1)
    fc2_b = w_ref[_R_SC:_R_SC + 1, 1:2]                    # (1, 1)

    # ---- attn: BN(7)->Linear(7->1)->ReLU->BN(1)->Linear(1->7)->Sigmoid (BN pre-folded) ----
    # all three branches at once (attention is per-sample, no batch coupling)
    a1 = jnp.sum(hu * aw1_r, axis=1, keepdims=True) + ab1  # (3B, 1)
    a1 = jnp.maximum(a1, 0.0)                              # ReLU
    w = jax.nn.sigmoid(a1 * aw2_r + ab2_r)                 # (3B, 7)
    hu2 = hu * w + hu                                      # residual re-weighting

    # ---- _embed16: BN(7)->Linear(7->64)->ReLU->BN(64)->Dropout(id)->Linear(64->1) ----
    # fc1 batched over all 3 branches in ONE MXU dot (3B,7) x (7,64)
    e = jnp.dot(hu2, fc1T, preferred_element_type=jnp.float32) + fc1_b   # (3B, 64)
    e = jnp.maximum(e, 0.0)                                              # ReLU
    emb = jnp.sum(e * fc2_r, axis=1, keepdims=True) + fc2_b              # (3B, 1)
    # TODO(synk): at lane-tiled batch sizes, make `emb` a lax.dot_general MXU contraction.

    # ---- per-branch L1 distance to that branch's batch mean, then write (B, 2) ----
    for idx, out_ref in enumerate((oa_ref, op_ref, on_ref)):
        h_b = hu2[idx * B:(idx + 1) * B, :]                              # (B, 7)
        mean_b = jnp.mean(h_b, axis=0, keepdims=True)                    # (1, 7) per-branch mean
        f1 = jnp.sum(jnp.abs(h_b - mean_b), axis=1, keepdims=True)       # (B, 1)
        out_ref[...] = jnp.concatenate([f1, emb[idx * B:(idx + 1) * B, :]], axis=1)


def triplet_forward(anchor, positive, negative, packed_params):
    B, C = anchor.shape
    # advisory cost hint: this call is tiny (few KB, ~25 KFLOP)
    cost = pl.CostEstimate(
        flops=3 * B * (2 * C + 4 * C + 2 * C * HIDDEN + 4 * HIDDEN),
        transcendentals=3 * B * C,
        bytes_accessed=(3 * B * C + P_ROWS * P_COLS + 3 * B * 2) * 4,
    )
    data_spec = pl.BlockSpec((B, C), lambda i: (0, 0))
    out_spec = pl.BlockSpec((B, 2), lambda i: (0, 0))
    fa, fp, fn_ = pl.pallas_call(
        _triplet_fused_kernel,
        out_shape=(jax.ShapeDtypeStruct((B, 2), jnp.float32),) * 3,
        grid=(1,),                                   # single fused step: all 3 branches
        in_specs=[
            data_spec, data_spec, data_spec,
            pl.BlockSpec((P_ROWS, P_COLS), lambda i: (0, 0)),   # weights: constant index map
        ],
        out_specs=(out_spec, out_spec, out_spec),
        compiler_params=pltpu.CompilerParams(dimension_semantics=("arbitrary",)),
        cost_estimate=cost,
    )(anchor, positive, negative, packed_params)
    return fa, fp, fn_


# ----------------------------- parameters -----------------------------

def _bn_params(kg, kb, km, kv, n):
    gamma = 1.0 + 0.1 * jax.random.normal(kg, (n,), jnp.float32)
    beta = 0.1 * jax.random.normal(kb, (n,), jnp.float32)
    rmean = 0.1 * jax.random.normal(km, (n,), jnp.float32)
    rvar = jax.random.uniform(kv, (n,), jnp.float32, minval=0.5, maxval=1.5)
    return gamma, beta, rmean, rvar


def _bn_fold(gamma, beta, rmean, rvar):
    scale = gamma / jnp.sqrt(rvar + BN_EPS)
    shift = beta - rmean * scale
    return scale, shift


def init_raw_params(key):
    ks = jax.random.split(key, 20)
    return {
        "abn0": _bn_params(ks[0], ks[1], ks[2], ks[3], CHANNEL),
        "aw1": jax.random.normal(ks[4], (CR, CHANNEL), jnp.float32) / jnp.sqrt(CHANNEL),
        "abn1": _bn_params(ks[5], ks[6], ks[7], ks[8], CR),
        "aw2": jax.random.normal(ks[9], (CHANNEL, CR), jnp.float32) / jnp.sqrt(CR),
        "bn0": _bn_params(ks[10], ks[11], ks[12], ks[13], CHANNEL),
        "fc1": jax.random.normal(ks[14], (HIDDEN, CHANNEL), jnp.float32) / jnp.sqrt(CHANNEL),
        "bn1": _bn_params(ks[15], ks[16], ks[17], ks[18], HIDDEN),
        "fc2": jax.random.normal(ks[19], (1, HIDDEN), jnp.float32) / jnp.sqrt(HIDDEN),
    }


def pack_params(raw):
    """Fold eval-mode BatchNorm into adjacent Linears and pack everything into (16, 64)."""
    s0, h0 = _bn_fold(*raw["abn0"])      # attn BN(7)
    s1, h1 = _bn_fold(*raw["abn1"])      # attn BN(1)
    sb0, hb0 = _bn_fold(*raw["bn0"])     # bn0 (7)
    sb1, hb1 = _bn_fold(*raw["bn1"])     # bn1 (64)

    aw1_f = raw["aw1"][0] * s0                         # (7,)
    ab1 = jnp.dot(raw["aw1"][0], h0)                   # ()
    aw2_f = raw["aw2"][:, 0] * s1[0]                   # (7,)
    ab2 = raw["aw2"][:, 0] * h1[0]                     # (7,)
    fc1_f = raw["fc1"] * sb0[None, :]                  # (64, 7)
    fc1_b = raw["fc1"] @ hb0                           # (64,)
    fc2_f = raw["fc2"][0] * sb1                        # (64,)
    fc2_b = jnp.dot(raw["fc2"][0], hb1)                # ()

    P = jnp.zeros((P_ROWS, P_COLS), jnp.float32)
    P = P.at[_R_FC1B, 0:HIDDEN].set(fc1_b)
    P = P.at[_R_FC2, 0:HIDDEN].set(fc2_f)
    P = P.at[_R_AW1, 0:CHANNEL].set(aw1_f)
    P = P.at[_R_AW2, 0:CHANNEL].set(aw2_f)
    P = P.at[_R_AB2, 0:CHANNEL].set(ab2)
    P = P.at[_R_SC, 0].set(ab1)
    P = P.at[_R_SC, 1].set(fc2_b)
    P = P.at[_R_FC1T:_R_FC1T + CHANNEL, 0:HIDDEN].set(fc1_f.T)
    return P


# ------------------------- pure-JAX reference -------------------------

def _bn_eval(x, gamma, beta, rmean, rvar):
    return (x - rmean) / jnp.sqrt(rvar + BN_EPS) * gamma + beta


def reference_forward_once(hu, raw):
    hp = jax.lax.Precision.HIGHEST
    a = _bn_eval(hu, *raw["abn0"])
    a = jnp.dot(a, raw["aw1"].T, precision=hp)
    a = jnp.maximum(a, 0.0)
    a = _bn_eval(a, *raw["abn1"])
    a = jnp.dot(a, raw["aw2"].T, precision=hp)
    w = jax.nn.sigmoid(a)
    hu2 = hu * w + hu
    f1 = jnp.sum(jnp.abs(hu2 - hu2.mean(0, keepdims=True)), axis=1, keepdims=True)
    e = _bn_eval(hu2, *raw["bn0"])
    e = jnp.dot(e, raw["fc1"].T, precision=hp)
    e = jnp.maximum(e, 0.0)
    e = _bn_eval(e, *raw["bn1"])
    e = jnp.dot(e, raw["fc2"].T, precision=hp)
    return jnp.concatenate([f1, e], axis=1)


if __name__ == "__main__":
    import numpy as np

    key = jax.random.PRNGKey(0)
    k_param, k_a, k_p, k_n = jax.random.split(key, 4)
    raw = init_raw_params(k_param)
    packed = pack_params(raw)

    B = 8
    anchor = jax.random.normal(k_a, (B, CHANNEL), jnp.float32)
    positive = jax.random.normal(k_p, (B, CHANNEL), jnp.float32)
    negative = jax.random.normal(k_n, (B, CHANNEL), jnp.float32)

    fa, fp, fn_ = jax.jit(triplet_forward)(anchor, positive, negative, packed)
    jax.block_until_ready((fa, fp, fn_))

    assert fa.shape == (B, 2) and fp.shape == (B, 2) and fn_.shape == (B, 2)
    assert fa.dtype == jnp.float32

    # sanity check against an unfolded eval-mode reference
    for got, x in ((fa, anchor), (fp, positive), (fn_, negative)):
        want = reference_forward_once(x, raw)
        np.testing.assert_allclose(np.asarray(got), np.asarray(want), rtol=1e-2, atol=1e-2)

    print("KERNEL_OK")
</pallas_src>

<mosaic_0001>
module attributes {stable_mosaic.version = 11 : i64} {
  func.func @_triplet_fused_kernel(%arg0: i32, %arg1: memref<8x7xf32, #tpu.memory_space<vmem>>, %arg2: memref<8x7xf32, #tpu.memory_space<vmem>>, %arg3: memref<8x7xf32, #tpu.memory_space<vmem>>, %arg4: memref<16x64xf32, #tpu.memory_space<vmem>>, %arg5: memref<8x2xf32, #tpu.memory_space<vmem>>, %arg6: memref<8x2xf32, #tpu.memory_space<vmem>>, %arg7: memref<8x2xf32, #tpu.memory_space<vmem>>) attributes {dimension_semantics = [#tpu.dimension_semantics<arbitrary>], iteration_bounds = array<i64: 1>, scalar_prefetch = 0 : i64, scratch_operands = 0 : i64, tpu.core_type = #tpu.core_type<tc>, window_params = [{pipeline_mode = #tpu.pipeline_mode<synchronous>, transform_indices = @transform_0, window_bounds = array<i64: 8, 7>}, {pipeline_mode = #tpu.pipeline_mode<synchronous>, transform_indices = @transform_1, window_bounds = array<i64: 8, 7>}, {pipeline_mode = #tpu.pipeline_mode<synchronous>, transform_indices = @transform_2, window_bounds = array<i64: 8, 7>}, {pipeline_mode = #tpu.pipeline_mode<synchronous>, transform_indices = @transform_3, window_bounds = array<i64: 16, 64>}, {pipeline_mode = #tpu.pipeline_mode<synchronous>, transform_indices = @transform_4, window_bounds = array<i64: 8, 2>}, {pipeline_mode = #tpu.pipeline_mode<synchronous>, transform_indices = @transform_5, window_bounds = array<i64: 8, 2>}, {pipeline_mode = #tpu.pipeline_mode<synchronous>, transform_indices = @transform_6, window_bounds = array<i64: 8, 2>}]} {
    %c0 = arith.constant 0 : index
    %c0_0 = arith.constant 0 : index
    %0 = vector.load %arg1[%c0, %c0_0] : memref<8x7xf32, #tpu.memory_space<vmem>>, vector<8x7xf32>
    %c0_1 = arith.constant 0 : index
    %c0_2 = arith.constant 0 : index
    %1 = vector.load %arg2[%c0_1, %c0_2] : memref<8x7xf32, #tpu.memory_space<vmem>>, vector<8x7xf32>
    %c0_3 = arith.constant 0 : index
    %c0_4 = arith.constant 0 : index
    %2 = vector.load %arg3[%c0_3, %c0_4] : memref<8x7xf32, #tpu.memory_space<vmem>>, vector<8x7xf32>
    %3 = tpu.concatenate %0, %1, %2 in 0 : vector<8x7xf32>, vector<8x7xf32>, vector<8x7xf32> -> vector<24x7xf32>
    %c8 = arith.constant 8 : index
    %c0_5 = arith.constant 0 : index
    %4 = vector.load %arg4[%c8, %c0_5] : memref<16x64xf32, #tpu.memory_space<vmem>>, vector<7x64xf32>
    %c0_6 = arith.constant 0 : index
    %c0_7 = arith.constant 0 : index
    %5 = vector.load %arg4[%c0_6, %c0_7] : memref<16x64xf32, #tpu.memory_space<vmem>>, vector<1x64xf32>
    %c1 = arith.constant 1 : index
    %c0_8 = arith.constant 0 : index
    %6 = vector.load %arg4[%c1, %c0_8] : memref<16x64xf32, #tpu.memory_space<vmem>>, vector<1x64xf32>
    %c2 = arith.constant 2 : index
    %c0_9 = arith.constant 0 : index
    %7 = vector.load %arg4[%c2, %c0_9] : memref<16x64xf32, #tpu.memory_space<vmem>>, vector<1x7xf32>
    %c3 = arith.constant 3 : index
    %c0_10 = arith.constant 0 : index
    %8 = vector.load %arg4[%c3, %c0_10] : memref<16x64xf32, #tpu.memory_space<vmem>>, vector<1x7xf32>
    %c4 = arith.constant 4 : index
    %c0_11 = arith.constant 0 : index
    %9 = vector.load %arg4[%c4, %c0_11] : memref<16x64xf32, #tpu.memory_space<vmem>>, vector<1x7xf32>
    %c5 = arith.constant 5 : index
    %c0_12 = arith.constant 0 : index
    %10 = vector.load %arg4[%c5, %c0_12] : memref<16x64xf32, #tpu.memory_space<vmem>>, vector<1x1xf32>
    %c5_13 = arith.constant 5 : index
    %c1_14 = arith.constant 1 : index
    %11 = vector.load %arg4[%c5_13, %c1_14] : memref<16x64xf32, #tpu.memory_space<vmem>>, vector<1x1xf32>
    %12 = vector.broadcast %7 : vector<1x7xf32> to vector<24x7xf32>
    %13 = arith.mulf %3, %12 : vector<24x7xf32>
    %cst = arith.constant dense<0.000000e+00> : vector<24xf32>
    %14 = vector.multi_reduction <add>, %13, %cst [1] : vector<24x7xf32> to vector<24xf32>
    %15 = vector.shape_cast %14 : vector<24xf32> to vector<24x1xf32>
    %16 = vector.broadcast %10 : vector<1x1xf32> to vector<24x1xf32>
    %17 = arith.addf %15, %16 : vector<24x1xf32>
    %cst_15 = arith.constant 0.000000e+00 : f32
    %18 = vector.broadcast %cst_15 : f32 to vector<24x1xf32>
    %19 = arith.maximumf %17, %18 : vector<24x1xf32>
    %20 = vector.broadcast %19 : vector<24x1xf32> to vector<24x7xf32>
    %21 = vector.broadcast %8 : vector<1x7xf32> to vector<24x7xf32>
    %22 = arith.mulf %20, %21 : vector<24x7xf32>
    %23 = vector.broadcast %9 : vector<1x7xf32> to vector<24x7xf32>
    %24 = arith.addf %22, %23 : vector<24x7xf32>
    %25 = arith.negf %24 : vector<24x7xf32>
    %26 = math.exp %25 : vector<24x7xf32>
    %cst_16 = arith.constant 1.000000e+00 : f32
    %27 = vector.broadcast %cst_16 : f32 to vector<24x7xf32>
    %28 = arith.addf %27, %26 : vector<24x7xf32>
    %29 = arith.divf %27, %28 : vector<24x7xf32>
    %30 = arith.mulf %3, %29 : vector<24x7xf32>
    %31 = arith.addf %30, %3 : vector<24x7xf32>
    %cst_17 = arith.constant dense<0.000000e+00> : vector<24x64xf32>
    %32 = tpu.matmul %31, %4, %cst_17 {dimension_numbers = #tpu.dot_dimension_numbers<[1], [0], [0], [1], [0, 0, 1, 1], [], []>} : vector<24x7xf32>, vector<7x64xf32>, vector<24x64xf32> -> vector<24x64xf32>
    %33 = vector.broadcast %5 : vector<1x64xf32> to vector<24x64xf32>
    %34 = arith.addf %32, %33 : vector<24x64xf32>
    %cst_18 = arith.constant 0.000000e+00 : f32
    %35 = vector.broadcast %cst_18 : f32 to vector<24x64xf32>
    %36 = arith.maximumf %34, %35 : vector<24x64xf32>
    %37 = vector.broadcast %6 : vector<1x64xf32> to vector<24x64xf32>
    %38 = arith.mulf %36, %37 : vector<24x64xf32>
    %cst_19 = arith.constant dense<0.000000e+00> : vector<24xf32>
    %39 = vector.multi_reduction <add>, %38, %cst_19 [1] : vector<24x64xf32> to vector<24xf32>
    %40 = vector.shape_cast %39 : vector<24xf32> to vector<24x1xf32>
    %41 = vector.broadcast %11 : vector<1x1xf32> to vector<24x1xf32>
    %42 = arith.addf %40, %41 : vector<24x1xf32>
    %43 = vector.extract_strided_slice %31 {offsets = [0, 0], sizes = [8, 7], strides = [1, 1]} : vector<24x7xf32> to vector<8x7xf32>
    %cst_20 = arith.constant dense<0.000000e+00> : vector<7xf32>
    %44 = vector.multi_reduction <add>, %43, %cst_20 [0] : vector<8x7xf32> to vector<7xf32>
    %45 = vector.shape_cast %44 : vector<7xf32> to vector<1x7xf32>
    %cst_21 = arith.constant 8.000000e+00 : f32
    %46 = vector.broadcast %cst_21 : f32 to vector<1x7xf32>
    %47 = arith.divf %45, %46 : vector<1x7xf32>
    %48 = vector.broadcast %47 : vector<1x7xf32> to vector<8x7xf32>
    %49 = arith.subf %43, %48 : vector<8x7xf32>
    %50 = math.absf %49 : vector<8x7xf32>
    %cst_22 = arith.constant dense<0.000000e+00> : vector<8xf32>
    %51 = vector.multi_reduction <add>, %50, %cst_22 [1] : vector<8x7xf32> to vector<8xf32>
    %52 = vector.shape_cast %51 : vector<8xf32> to vector<8x1xf32>
    %53 = vector.extract_strided_slice %42 {offsets = [0, 0], sizes = [8, 1], strides = [1, 1]} : vector<24x1xf32> to vector<8x1xf32>
    %54 = tpu.concatenate %52, %53 in 1 : vector<8x1xf32>, vector<8x1xf32> -> vector<8x2xf32>
    %c0_23 = arith.constant 0 : index
    %c0_24 = arith.constant 0 : index
    %55 = vector.load %arg5[%c0_23, %c0_24] : memref<8x2xf32, #tpu.memory_space<vmem>>, vector<8x2xf32>
    tpu.vector_store %arg5[%c0_23, %c0_24], %54 {strides = array<i32>} : memref<8x2xf32, #tpu.memory_space<vmem>>, vector<8x2xf32>,
    %56 = vector.extract_strided_slice %31 {offsets = [8, 0], sizes = [8, 7], strides = [1, 1]} : vector<24x7xf32> to vector<8x7xf32>
    %cst_25 = arith.constant dense<0.000000e+00> : vector<7xf32>
    %57 = vector.multi_reduction <add>, %56, %cst_25 [0] : vector<8x7xf32> to vector<7xf32>
    %58 = vector.shape_cast %57 : vector<7xf32> to vector<1x7xf32>
    %cst_26 = arith.constant 8.000000e+00 : f32
    %59 = vector.broadcast %cst_26 : f32 to vector<1x7xf32>
    %60 = arith.divf %58, %59 : vector<1x7xf32>
    %61 = vector.broadcast %60 : vector<1x7xf32> to vector<8x7xf32>
    %62 = arith.subf %56, %61 : vector<8x7xf32>
    %63 = math.absf %62 : vector<8x7xf32>
    %cst_27 = arith.constant dense<0.000000e+00> : vector<8xf32>
    %64 = vector.multi_reduction <add>, %63, %cst_27 [1] : vector<8x7xf32> to vector<8xf32>
    %65 = vector.shape_cast %64 : vector<8xf32> to vector<8x1xf32>
    %66 = vector.extract_strided_slice %42 {offsets = [8, 0], sizes = [8, 1], strides = [1, 1]} : vector<24x1xf32> to vector<8x1xf32>
    %67 = tpu.concatenate %65, %66 in 1 : vector<8x1xf32>, vector<8x1xf32> -> vector<8x2xf32>
    %c0_28 = arith.constant 0 : index
    %c0_29 = arith.constant 0 : index
    %68 = vector.load %arg6[%c0_28, %c0_29] : memref<8x2xf32, #tpu.memory_space<vmem>>, vector<8x2xf32>
    tpu.vector_store %arg6[%c0_28, %c0_29], %67 {strides = array<i32>} : memref<8x2xf32, #tpu.memory_space<vmem>>, vector<8x2xf32>,
    %69 = vector.extract_strided_slice %31 {offsets = [16, 0], sizes = [8, 7], strides = [1, 1]} : vector<24x7xf32> to vector<8x7xf32>
    %cst_30 = arith.constant dense<0.000000e+00> : vector<7xf32>
    %70 = vector.multi_reduction <add>, %69, %cst_30 [0] : vector<8x7xf32> to vector<7xf32>
    %71 = vector.shape_cast %70 : vector<7xf32> to vector<1x7xf32>
    %cst_31 = arith.constant 8.000000e+00 : f32
    %72 = vector.broadcast %cst_31 : f32 to vector<1x7xf32>
    %73 = arith.divf %71, %72 : vector<1x7xf32>
    %74 = vector.broadcast %73 : vector<1x7xf32> to vector<8x7xf32>
    %75 = arith.subf %69, %74 : vector<8x7xf32>
    %76 = math.absf %75 : vector<8x7xf32>
    %cst_32 = arith.constant dense<0.000000e+00> : vector<8xf32>
    %77 = vector.multi_reduction <add>, %76, %cst_32 [1] : vector<8x7xf32> to vector<8xf32>
    %78 = vector.shape_cast %77 : vector<8xf32> to vector<8x1xf32>
    %79 = vector.extract_strided_slice %42 {offsets = [16, 0], sizes = [8, 1], strides = [1, 1]} : vector<24x1xf32> to vector<8x1xf32>
    %80 = tpu.concatenate %78, %79 in 1 : vector<8x1xf32>, vector<8x1xf32> -> vector<8x2xf32>
    %c0_33 = arith.constant 0 : index
    %c0_34 = arith.constant 0 : index
    %81 = vector.load %arg7[%c0_33, %c0_34] : memref<8x2xf32, #tpu.memory_space<vmem>>, vector<8x2xf32>
    tpu.vector_store %arg7[%c0_33, %c0_34], %80 {strides = array<i32>} : memref<8x2xf32, #tpu.memory_space<vmem>>, vector<8x2xf32>,
    return
  }
  func.func @transform_0(%arg0: i32) -> (i32, i32) {
    %c0_i32 = arith.constant 0 : i32
    %c0_i32_0 = arith.constant 0 : i32
    %c0_i32_1 = arith.constant 0 : i32
    return %c0_i32, %c0_i32_0 : i32, i32
  }
  func.func @transform_1(%arg0: i32) -> (i32, i32) {
    %c0_i32 = arith.constant 0 : i32
    %c0_i32_0 = arith.constant 0 : i32
    %c0_i32_1 = arith.constant 0 : i32
    return %c0_i32, %c0_i32_0 : i32, i32
  }
  func.func @transform_2(%arg0: i32) -> (i32, i32) {
    %c0_i32 = arith.constant 0 : i32
    %c0_i32_0 = arith.constant 0 : i32
    %c0_i32_1 = arith.constant 0 : i32
    return %c0_i32, %c0_i32_0 : i32, i32
  }
  func.func @transform_3(%arg0: i32) -> (i32, i32) {
    %c0_i32 = arith.constant 0 : i32
    %c0_i32_0 = arith.constant 0 : i32
    %c0_i32_1 = arith.constant 0 : i32
    return %c0_i32, %c0_i32_0 : i32, i32
  }
  func.func @transform_4(%arg0: i32) -> (i32, i32) {
    %c0_i32 = arith.constant 0 : i32
    %c0_i32_0 = arith.constant 0 : i32
    %c0_i32_1 = arith.constant 0 : i32
    return %c0_i32, %c0_i32_0 : i32, i32
  }
  func.func @transform_5(%arg0: i32) -> (i32, i32) {
    %c0_i32 = arith.constant 0 : i32
    %c0_i32_0 = arith.constant 0 : i32
    %c0_i32_1 = arith.constant 0 : i32
    return %c0_i32, %c0_i32_0 : i32, i32
  }
  func.func @transform_6(%arg0: i32) -> (i32, i32) {
    %c0_i32 = arith.constant 0 : i32
    %c0_i32_0 = arith.constant 0 : i32
    %c0_i32_1 = arith.constant 0 : i32
    return %c0_i32, %c0_i32_0 : i32, i32
  }
}

</mosaic_0001>

<bundles_post_ra>
// kernel: triplet_forward.1
= control target key start
LH: loop header
LB: loop body
LE: loop exit
PB: predicated region body
PF: predicated region fallthrough
CT: control target
= control target key end

     0   :  { %12 = vsyncpa [#allocation3], 0  ;;  %s638_s0 = inlined_call_operand.hbm [shape: f32[8,7], index: 0, kind: input, shape index: {}]   ;;  %s639_s1 = inlined_call_operand.hbm [shape: f32[8,7], index: 1, kind: input, shape index: {}]   ;;  %s640_s2 = inlined_call_operand.hbm [shape: f32[8,7], index: 2, kind: input, shape index: {}]   ;;  %s641_s3 = inlined_call_operand.hbm [shape: f32[16,64], index: 3, kind: input, shape index: {}]   ;;  %s642_s4 = inlined_call_operand.vmem [shape: f32[8,2], index: 4, kind: output, shape index: {0}]   ;;  %s643_s5 = inlined_call_operand.vmem [shape: f32[8,2], index: 5, kind: output, shape index: {1}]   ;;  %s644_s6 = inlined_call_operand.vmem [shape: f32[8,2], index: 6, kind: output, shape index: {2}]  }
   0x1   :  { %13 = vsyncpa [#allocation5], 0 }
   0x2   :  { %14 = vsyncpa [#allocation8], 0  ;;  %s489_s21 = smov [#allocation4]   ;;  %s490_s23 = smov [#allocation2]  }
   0x3   :  { %s31_s22 = sshll.u32 %s489_s21, 4  ;;  %s21_s24 = sshll.u32 %s490_s23, 4  ;;  %s32_s22 = int_to_ptr.vmem [resolvable:$true] %s31_s22  ;;  %s22_s24 = int_to_ptr.vmem [resolvable:$true] %s21_s24 }
   0x4   :  { %s395_s27 = scalar_lea.hbm %s639_s1, 128 }
   0x5   :  { %p396_p0 = scmp.ne.s32.totalorder %s639_s1, %s395_s27  ;;  %p399_p1 = scmp.lt.u32.totalorder %s395_s27, %s639_s1 }
   0x7   :  { %p401_p2 = pnand %p399_p1, %p396_p0 }
   0x9   :  { %404 = shalt.err (!%p401_p2)
}
   0xa   :  { %s405_s8 = scalar_lea.vmem %s32_s22, 128  ;;  %p410_p4 = scmp.lt.s32.totalorder %s32_s22, %s32_s22 }
   0xb   :  { %p406_p3 = scmp.ne.s32.totalorder %s32_s22, %s405_s8  ;;  %p411_p5 = scmp.lt.s32.totalorder %s405_s8, %s405_s8 }
   0xd   :  { %p412_p6 = por %p411_p5, %p410_p4 }
   0xf   :  { %p413_p7 = pnand %p412_p6, %p406_p3 }
  0x11   :  { %416 = shalt.err (!%p413_p7)
}
  0x12   :  { %34 = dma.hbm_to_vmem [thread:$0]  %s639_s1, 128, %s32_s22, [#allocation5]  }
  0x13   :  { %s417_s13 = scalar_lea.hbm %s638_s0, 128 }
  0x14   :  { %p418_p8 = scmp.ne.s32.totalorder %s638_s0, %s417_s13  ;;  %p421_p9 = scmp.lt.u32.totalorder %s417_s13, %s638_s0 }
  0x16   :  { %p423_p10 = pnand %p421_p9, %p418_p8 }
  0x18   :  { %426 = shalt.err (!%p423_p10)
}
  0x19   :  { %s427_s18 = scalar_lea.vmem %s22_s24, 128  ;;  %p432_p12 = scmp.lt.s32.totalorder %s22_s24, %s22_s24 }
  0x1a   :  { %p428_p11 = scmp.ne.s32.totalorder %s22_s24, %s427_s18  ;;  %p433_p13 = scmp.lt.s32.totalorder %s427_s18, %s427_s18 }
  0x1c   :  { %p434_p0 = por %p433_p13, %p432_p12 }
  0x1e   :  { %p435_p1 = pnand %p434_p0, %p428_p11 }
  0x20   :  { %438 = shalt.err (!%p435_p1)
}
  0x21   :  { %24 = dma.hbm_to_vmem [thread:$0]  %s638_s0, 128, %s22_s24, [#allocation3]  }
  0x22   :  { %s491_s20 = smov [#allocation6]   ;;  %s492_s22 = smov [#allocation7]  }
  0x23   :  { %s41_s21 = sshll.u32 %s491_s20, 4  ;;  %s50_s23 = sshll.u32 %s492_s22, 4  ;;  %s42_s21 = int_to_ptr.vmem [resolvable:$true] %s41_s21  ;;  %s557_s23 = int_to_ptr.vmem [resolvable:$true] %s50_s23 }
  0x24   :  { %s439_s27 = scalar_lea.hbm %s640_s2, 128 }
  0x25   :  { %p440_p2 = scmp.ne.s32.totalorder %s640_s2, %s439_s27  ;;  %p443_p3 = scmp.lt.u32.totalorder %s439_s27, %s640_s2 }
  0x27   :  { %p445_p4 = pnand %p443_p3, %p440_p2 }
  0x29   :  { %448 = shalt.err (!%p445_p4)
}
  0x2a   :  { %s449_s0 = scalar_lea.vmem %s42_s21, 128  ;;  %p454_p6 = scmp.lt.s32.totalorder %s42_s21, %s42_s21 }
  0x2b   :  { %p450_p5 = scmp.ne.s32.totalorder %s42_s21, %s449_s0  ;;  %p455_p7 = scmp.lt.s32.totalorder %s449_s0, %s449_s0 }
  0x2d   :  { %p456_p8 = por %p455_p7, %p454_p6 }
  0x2f   :  { %p457_p9 = pnand %p456_p8, %p450_p5 }
  0x31   :  { %460 = shalt.err (!%p457_p9)
}
  0x32   :  { %44 = dma.hbm_to_vmem [thread:$0]  %s640_s2, 128, %s42_s21, [#allocation5]  }
  0x33   :  { %s461_s11 = scalar_lea.hbm %s641_s3, 256 }
  0x34   :  { %p462_p10 = scmp.ne.s32.totalorder %s641_s3, %s461_s11  ;;  %p465_p11 = scmp.lt.u32.totalorder %s461_s11, %s641_s3 }
  0x36   :  { %p467_p12 = pnand %p465_p11, %p462_p10 }
  0x38   :  { %470 = shalt.err (!%p467_p12)
}
  0x39   :  { %s471_s16 = scalar_lea.vmem %s557_s23, 256  ;;  %p476_p0 = scmp.lt.s32.totalorder %s557_s23, %s557_s23 }
  0x3a   :  { %p472_p13 = scmp.ne.s32.totalorder %s557_s23, %s471_s16  ;;  %p477_p1 = scmp.lt.s32.totalorder %s471_s16, %s471_s16 }
  0x3c   :  { %p478_p2 = por %p477_p1, %p476_p0 }
  0x3e   :  { %p479_p3 = pnand %p478_p2, %p472_p13 }
  0x40   :  { %482 = shalt.err (!%p479_p3)
}
  0x41   :  { %s493_s2 = smov 128   ;;  %s494_s17 = smov 8  }
  0x42   :  { %56 = dma.hbm_to_vmem [thread:$0]  %s641_s3, 256, %s557_s23, [#allocation8], %s493_s2, %s493_s2, %s494_s17  }
  0x43   :  { %483 = dma.done.wait [#allocation3], 128  }
  0x44   :  { %484 = vsyncadd [#allocation3], 4294967168 }
  0x45   :  { %485 = dma.done.wait [#allocation5], 256  }
  0x46   :  { %486 = vsyncadd [#allocation5], 4294967040 }
  0x47   :  { %487 = dma.done.wait [#allocation8], 256  }
  0x48   :  { %488 = vsyncadd [#allocation8], 4294967040  ;;  %v588_v0 = vld [vmem:[#allocation4] sm:$0xff]  ;;  %v342_v1 = vld [vmem:[#allocation7 + $0x2] ss:$0 sm:$0xff]  ;;  %vm86_vm0 = vcmask 56320  }
  0x49   :  { %v590_v2 = vld [vmem:[#allocation6] sm:$0xff]  ;;  %v84_v3 = vmul.f32 %v342_v1, %v588_v0  ;;  %v594_v5 = vld [vmem:[#allocation2] sm:$0xff]  ;;  %v495_v10 = vmov 0   ;;  %v600_v11 = vld [vmem:[#allocation7 + $0x5] ss:$0 sm:$0xff]  ;;  %vm172_vm1 = vcmask 1046528  }
  0x4a   :  { %v85_v4 = vmul.f32 %v342_v1, %v590_v2  ;;  %v83_v6 = vmul.f32 %v342_v1, %v594_v5  ;;  %381 = vset.pattern.permute.xlu1 %v495_v10  ;;  %382 = vset.pattern.permute.xlu0 %v495_v10  ;;  %v72_v21 = vld [vmem:[#allocation7 + $0x8] sm:$0x7f]  ;;  %v496_v22 = vmov 0.0   ;;  %vm497_vm2 = vmmov 0   ;;  %v344_v23 = vld [vmem:[#allocation7 + $0x3] ss:$0 sm:$0xff] }
  0x4b   :  { %v90_v7 = vsel %vm86_vm0, %v84_v3, 0.0  ;;  %370 = vmatprep.subr.mxu1 %v496_v22  ;;  %364 = vmatprep.mubr.msk.f32.mxu1 %vm497_vm2, %v496_v22  ;;  %v345_v24 = vld [vmem:[#allocation7 + $0x4] ss:$0 sm:$0xff]  ;;  %vm266_vm3 = vcmask 523264   ;;  %vm293_vm4 = vcmask 7168   ;;  %vm295_vm5 = vcmask 15360  }
  0x4c   :  { %v93_v8 = vsel %vm86_vm0, %v85_v4, 0.0  ;;  %91 = vadd.xlane.f32.xlu0 %v90_v7  ;;  %v87_v9 = vsel %vm86_vm0, %v83_v6, 0.0  ;;  %371 = vmatpush3.msk.msra.mxu1 %vm172_vm1, %v72_v21 }
  0x4d   :  { %94 = vadd.xlane.f32.xlu1 %v93_v8  ;;  %359 = vmatprep.subr.mxu0 %v496_v22 }
  0x4e   :  { %360 = vmatpush3.msk.msra.mxu0 %vm172_vm1, %v72_v21  ;;  %361 = vmatprep.mubr.msk.f32.mxu0 %vm497_vm2, %v496_v22 }
  0x50   :  { %88 = vadd.xlane.f32.xlu0 %v87_v9  ;;  %v354_v9 = vld [vmem:[#allocation7 + $0x1] ss:$0 sm:$0xff] }
  0xd9   :  { %v92_v12 = vpop.xlane.xlu0 %91 }
  0xda   :  { %v95_v13 = vpop.xlane.xlu1 %94  ;;  %v101_v14 = vadd.f32 %v600_v11, %v92_v12 }
  0xdb   :  { %v102_v15 = vadd.f32 %v600_v11, %v95_v13 }
  0xdc   :  { %v104_v16 = vmax.f32 %v101_v14, 0.0 }
  0xdd   :  { %v89_v17 = vpop.xlane.xlu0 %88  ;;  %v105_v18 = vmax.f32 %v102_v15, 0.0 }
  0xde   :  { %v100_v19 = vadd.f32 %v600_v11, %v89_v17  ;;  %113 = vperm.xlu1 %381, %v104_v16  }
  0xe0   :  { %v103_v20 = vmax.f32 %v100_v19, 0.0 }
  0xe2   :  { %118 = vperm.xlu1 %381, %v105_v18   ;;  %108 = vperm.xlu0 %382, %v103_v20  }
 0x15d   :  { %v114_v25 = vpop.permute.xlu1 %113 }
 0x15e   :  { %v126_v26 = vmul.f32 %v344_v23, %v114_v25 }
 0x160   :  { %v133_v27 = vadd.f32 %v345_v24, %v126_v26 }
 0x161   :  { %v119_v28 = vpop.permute.xlu1 %118  ;;  %v109_v29 = vpop.permute.xlu0 %108 }
 0x162   :  { %v347_v30 = vmul.f32 -1.442695, %v133_v27  ;;  %v127_v31 = vmul.f32 %v344_v23, %v119_v28  ;;  %v125_v32 = vmul.f32 %v344_v23, %v109_v29 }
 0x164   :  { %383 = vpow2.f32 %v347_v30  ;;  %v134_v33 = vadd.f32 %v345_v24, %v127_v31  ;;  %v132_v34 = vadd.f32 %v345_v24, %v125_v32 }
 0x166   :  { %v348_v35 = vmul.f32 -1.442695, %v134_v33  ;;  %v346_v36 = vmul.f32 -1.442695, %v132_v34 }
 0x168   :  { %385 = vpow2.f32 %v348_v35 }
 0x169   :  { %387 = vpow2.f32 %v346_v36 }
 0x16e   :  { %v384_v37 = vpop.eup %383 }
 0x16f   :  { %v145_v38 = vadd.f32 1.0, %v384_v37 }
 0x171   :  { %389 = vrcp.f32 %v145_v38 }
 0x172   :  { %v386_v39 = vpop.eup %385 }
 0x173   :  { %v388_v40 = vpop.eup %387  ;;  %v146_v41 = vadd.f32 1.0, %v386_v39 }
 0x174   :  { %v144_v42 = vadd.f32 1.0, %v388_v40 }
 0x175   :  { %391 = vrcp.f32 %v146_v41 }
 0x176   :  { %393 = vrcp.f32 %v144_v42 }
 0x17b   :  { %v390_v43 = vpop.eup %389 }
 0x17c   :  { %v154_v44 = vmul.f32 %v390_v43, %v588_v0 }
 0x17e   :  { %v157_v45 = vadd.f32 %v154_v44, %v588_v0 }
 0x17f   :  { %v392_v46 = vpop.eup %391 }
 0x180   :  { %v394_v47 = vpop.eup %393  ;;  %365 = vmatmul.mubr.msk.f32.vlgmr.msra.gmra.mrb[0].mxu1 %vm86_vm0, %v157_v45  ;;  %v155_v48 = vmul.f32 %v392_v46, %v590_v2  ;;  %v297_v54 = vsel %vm86_vm0, %v157_v45, 0.0 }
 0x181   :  { %v153_v49 = vmul.f32 %v394_v47, %v594_v5  ;;  %367 = vmatprep.mubr.msk.f32.mxu1 %vm497_vm2, %v496_v22  ;;  %v298_v55 = vrot.slane %v297_v54, 4 }
 0x182   :  { %v158_v50 = vadd.f32 %v155_v48, %v590_v2  ;;  %v349_v2 = vld [vmem:[#allocation7] ss:$0 sm:$0xff] }
 0x183   :  { %v156_v51 = vadd.f32 %v153_v49, %v594_v5  ;;  %v299_v57 = vadd.f32 %v298_v55, %v297_v54 }
 0x184   :  { %368 = vmatmul.mubr.msk.f32.gmra.mrb[2].mxu1 %vm86_vm0, %v158_v50  ;;  %v312_v59 = vsel %vm86_vm0, %v158_v50, 0.0 }
 0x185   :  { %362 = vmatmul.mubr.msk.f32.vlgmr.msra.gmra.mrb[0].mxu0 %vm86_vm0, %v156_v51  ;;  %v279_v52 = vsel %vm86_vm0, %v156_v51, 0.0  ;;  %v300_v60 = vrot.slane %v299_v57, 2  ;;  %v313_v62 = vrot.slane %v312_v59, 4 }
 0x186   :  { %v280_v53 = vrot.slane %v279_v52, 4 }
 0x187   :  { %v301_v63 = vadd.f32 %v300_v60, %v299_v57  ;;  %v314_v1 = vadd.f32 %v313_v62, %v312_v59 }
 0x188   :  { %v281_v56 = vadd.f32 %v280_v53, %v279_v52 }
 0x189   :  { %v302_v3 = vrot.slane %v301_v63, 1  ;;  %v315_v6 = vrot.slane %v314_v1, 2 }
 0x18a   :  { %v282_v58 = vrot.slane %v281_v56, 2 }
 0x18b   :  { %v303_v12 = vadd.f32 %v302_v3, %v301_v63  ;;  %v316_v15 = vadd.f32 %v315_v6, %v314_v1 }
 0x18c   :  { %v283_v61 = vadd.f32 %v282_v58, %v281_v56 }
 0x18d   :  { %v304_v22 = vmul.f32 0.125, %v303_v12  ;;  %v317_v25 = vrot.slane %v316_v15, 1 }
 0x18e   :  { %v284_v0 = vrot.slane %v283_v61, 1 }
 0x18f   :  { %v305_v27 = vsub.f32 %v157_v45, %v304_v22  ;;  %v318_v31 = vadd.f32 %v317_v25, %v316_v15 }
 0x190   :  { %v285_v5 = vadd.f32 %v284_v0, %v283_v61 }
 0x191   :  { %v306_v34 = vand.u32 2147483647, %v305_v27  ;;  %v319_v35 = vmul.f32 0.125, %v318_v31 }
 0x192   :  { %v287_v14 = vmul.f32 0.125, %v285_v5 }
 0x193   :  { %v307_v36 = vsel %vm86_vm0, %v306_v34, 0.0  ;;  %v320_v38 = vsub.f32 %v158_v50, %v319_v35 }
 0x194   :  { %v288_v24 = vsub.f32 %v156_v51, %v287_v14 }
 0x195   :  { %v321_v40 = vand.u32 2147483647, %v320_v38 }
 0x196   :  { %v289_v30 = vand.u32 2147483647, %v288_v24 }
 0x197   :  { %v322_v41 = vsel %vm86_vm0, %v321_v40, 0.0 }
 0x198   :  { %v290_v33 = vsel %vm86_vm0, %v289_v30, 0.0 }
 0x253   :  { %v247_v4 = vpop.f32.mrb[0].mxu1 }
 0x254   :  { %v248_v7 = vadd.f32 %v349_v2, %v247_v4  ;;  %v366_v8 = vpop.f32.mrb[1].mxu1 }
 0x256   :  { %v257_v10 = vmax.f32 %v248_v7, 0.0 }
 0x257   :  { %v252_v13 = vpop.f32.mrb[2].mxu1 }
 0x258   :  { %v242_v16 = vpop.f32.mrb[0].mxu0  ;;  %v264_v17 = vmul.f32 %v354_v9, %v257_v10  ;;  %v369_v18 = vpop.f32.mrb[3].mxu1  ;;  %v253_v28 = vadd.f32 %v349_v2, %v252_v13 }
 0x259   :  { %v243_v19 = vadd.f32 %v349_v2, %v242_v16  ;;  %v363_v20 = vpop.f32.mrb[1].mxu0 }
 0x25a   :  { %v270_v21 = vsel %vm266_vm3, %v264_v17, 0.0  ;;  %v258_v32 = vmax.f32 %v253_v28, 0.0 }
 0x25b   :  { %v256_v23 = vmax.f32 %v243_v19, 0.0  ;;  %271 = vadd.xlane.f32.xlu0 %v270_v21 }
 0x25c   :  { %v265_v37 = vmul.f32 %v354_v9, %v258_v32 }
 0x25d   :  { %v263_v26 = vmul.f32 %v354_v9, %v256_v23 }
 0x25e   :  { %v273_v39 = vsel %vm266_vm3, %v265_v37, 0.0 }
 0x25f   :  { %v267_v29 = vsel %vm266_vm3, %v263_v26, 0.0 }
 0x260   :  { %268 = vadd.xlane.f32.xlu1 %v267_v29 }
 0x264   :  { %291 = vadd.xlane.f32.xlu1 %v290_v33 }
 0x268   :  { %308 = vadd.xlane.f32.xlu1 %v307_v36 }
 0x26c   :  { %274 = vadd.xlane.f32.xlu1 %v273_v39 }
 0x270   :  { %323 = vadd.xlane.f32.xlu1 %v322_v41 }
 0x2e8   :  { %v272_v44 = vpop.xlane.xlu0 %271 }
 0x2e9   :  { %v277_v47 = vadd.f32 %v600_v11, %v272_v44 }
 0x2ed   :  { %v269_v42 = vpop.xlane.xlu1 %268 }
 0x2ee   :  { %v276_v43 = vadd.f32 %v600_v11, %v269_v42 }
 0x2f1   :  { %v292_v45 = vpop.xlane.xlu1 %291 }
 0x2f2   :  { %v294_v46 = vsel %vm293_vm4, %v292_v45, %v276_v43 }
 0x2f3   :  { %296 = vst.msk [vmem:[%s642_s4] sm:$0xff] %vm295_vm5, %v294_v46 }
 0x2f5   :  { %v309_v48 = vpop.xlane.xlu1 %308 }
 0x2f6   :  { %v310_v49 = vsel %vm293_vm4, %v309_v48, %v277_v47 }
 0x2f7   :  { %311 = vst.msk [vmem:[%s643_s5] sm:$0xff] %vm295_vm5, %v310_v49 }
 0x2f9   :  { %v275_v50 = vpop.xlane.xlu1 %274 }
 0x2fa   :  { %v278_v51 = vadd.f32 %v600_v11, %v275_v50 }
 0x2fd   :  { %v324_v52 = vpop.xlane.xlu1 %323 }
 0x2fe   :  { %v325_v53 = vsel %vm293_vm4, %v324_v52, %v278_v51 }
 0x2ff   :  { %326 = vst.msk [vmem:[%s644_s6] sm:$0xff] %vm295_vm5, %v325_v53 }
 0x300   :  { %339 = vsyncpa [#allocation3], 1 }
 0x301   :  { %340 = vsyncpa [#allocation5], 1 }
 0x302   :  { %341 = vsyncpa [#allocation8], 1 }

</bundles_post_ra>
